<compile_context>
chip_gen: v5e
topology: v5e:2x2
jax: 0.10.0
libtpu: 0.0.40
codegen_flags: <defaults>
</compile_context>

<pallas_src>
import functools

import jax
import jax.numpy as jnp
from jax import lax
from jax.experimental import pallas as pl
from jax.experimental.pallas import tpu as pltpu


# ---------------------------------------------------------------------------
# Hardware-aware VMEM budget
# ---------------------------------------------------------------------------
def _vmem_capacity_bytes():
    try:
        return int(pltpu.get_tpu_info().vmem_capacity_bytes)
    except Exception:
        return 64 * 1024 * 1024  # v7x per-core VMEM (smallest of v5e/v6e/v7x)


_VMEM_CAP = _vmem_capacity_bytes()
_VMEM_LIMIT = (_VMEM_CAP * 3) // 4  # leave headroom under physical VMEM


def _cparams(dims):
    return pltpu.CompilerParams(dimension_semantics=dims,
                                vmem_limit_bytes=_VMEM_LIMIT)


# ---------------------------------------------------------------------------
# Tile pickers (respect last-two-dims constraint: divisible by 8/128 or full)
# ---------------------------------------------------------------------------
def _pick_row_tile(r):
    for t in (512, 256, 128):
        if r % t == 0:
            return t
    return r if r <= 1024 else 128  # ragged tail: Pallas masks output writes


def _pick_q_tile(n, batch):
    # With B == 1 prefer >=2 q tiles so both v7x TensorCores get work.
    cands = (256, 128) if (batch == 1 and n >= 256) else (512, 256, 128)
    for t in cands:
        if n % t == 0:
            return t
    return n if n <= 512 else 128


def _pick_kv_tile(L, bytes_per_kv_row, budget):
    """Largest kv tile fitting `budget` (double-buffered K+V rows).

    Prefers tl == L: the K/V block index is then constant across q tiles, so
    Pallas DMAs K/V once per batch and keeps them VMEM-resident.
    Returns (tile, needs_pad_mask)."""
    if 2 * L * bytes_per_kv_row <= budget:
        return L, False
    cap = max(8, (budget // (2 * bytes_per_kv_row)) // 8 * 8)
    t = min(cap, (L // 8) * 8)
    while t >= 8:
        if L % t == 0:
            return t, False
        t -= 8
    # No 8-aligned divisor fits: pad K/V and mask padded columns in-kernel.
    return cap, True


def _pick_contract_tile(d):
    for t in (512, 256):
        if d % t == 0:
            return t
    return d


def _pick_out_tile(d):
    for t in (512, 256, 128):
        if d % t == 0:
            return t
    return d


# ---------------------------------------------------------------------------
# Kernel 1: simple Q projection (full weight resident; dp_scale pre-folded)
# ---------------------------------------------------------------------------
def _q_proj_kernel(x_ref, w_ref, b_ref, o_ref):
    x = x_ref[...].astype(w_ref.dtype)  # no-op unless matmul_dtype differs
    y = jnp.dot(x, w_ref[...], preferred_element_type=jnp.float32)
    o_ref[...] = (y + b_ref[...]).astype(o_ref.dtype)


def q_proj_simple(x2d, w, b, out_dtype):
    R, Din = x2d.shape
    Dout = w.shape[1]
    tm = _pick_row_tile(R)
    return pl.pallas_call(
        _q_proj_kernel,
        out_shape=jax.ShapeDtypeStruct((R, Dout), out_dtype),
        grid=(pl.cdiv(R, tm),),
        in_specs=[
            pl.BlockSpec((tm, Din), lambda i: (i, 0)),
            # Constant index maps: weight/bias DMA'd once, kept VMEM-resident.
            pl.BlockSpec((Din, Dout), lambda i: (0, 0)),
            pl.BlockSpec((1, Dout), lambda i: (0, 0)),
        ],
        out_specs=pl.BlockSpec((tm, Dout), lambda i: (i, 0)),
        compiler_params=_cparams(("parallel",)),
    )(x2d, w, b.reshape(1, Dout))


# ---------------------------------------------------------------------------
# Kernel 2: fused K and V projection (single x_kv HBM read, two matmuls)
# ---------------------------------------------------------------------------
def _kv_proj_kernel(x_ref, wk_ref, bk_ref, wv_ref, bv_ref, k_ref, v_ref):
    x = x_ref[...].astype(wk_ref.dtype)
    k = jnp.dot(x, wk_ref[...], preferred_element_type=jnp.float32) + bk_ref[...]
    v = jnp.dot(x, wv_ref[...], preferred_element_type=jnp.float32) + bv_ref[...]
    k_ref[...] = k.astype(k_ref.dtype)
    v_ref[...] = v.astype(v_ref.dtype)


def kv_proj_fused(x2d, wk, bk, wv, bv, out_dtype):
    R, Din = x2d.shape
    Dk, Dv = wk.shape[1], wv.shape[1]
    tm = _pick_row_tile(R)
    return pl.pallas_call(
        _kv_proj_kernel,
        out_shape=(jax.ShapeDtypeStruct((R, Dk), out_dtype),
                   jax.ShapeDtypeStruct((R, Dv), out_dtype)),
        grid=(pl.cdiv(R, tm),),
        in_specs=[
            pl.BlockSpec((tm, Din), lambda i: (i, 0)),
            pl.BlockSpec((Din, Dk), lambda i: (0, 0)),
            pl.BlockSpec((1, Dk), lambda i: (0, 0)),
            pl.BlockSpec((Din, Dv), lambda i: (0, 0)),
            pl.BlockSpec((1, Dv), lambda i: (0, 0)),
        ],
        out_specs=(pl.BlockSpec((tm, Dk), lambda i: (i, 0)),
                   pl.BlockSpec((tm, Dv), lambda i: (i, 0))),
        compiler_params=_cparams(("parallel",)),
    )(x2d, wk, bk.reshape(1, Dk), wv, bv.reshape(1, Dv))


# ---------------------------------------------------------------------------
# Kernel 3: tiled linear (rows x Dout x Din) for weights too big for VMEM
# ---------------------------------------------------------------------------
def _linear_tiled_kernel(x_ref, w_ref, b_ref, o_ref, acc_ref):
    k = pl.program_id(2)

    @pl.when(k == 0)
    def _():
        acc_ref[...] = jnp.zeros_like(acc_ref)

    x = x_ref[...].astype(w_ref.dtype)
    acc_ref[...] += jnp.dot(x, w_ref[...], preferred_element_type=jnp.float32)

    @pl.when(k == pl.num_programs(2) - 1)
    def _():
        o_ref[...] = (acc_ref[...] + b_ref[...]).astype(o_ref.dtype)


def linear_tiled(x2d, w, b, out_dtype):
    R, Din = x2d.shape
    Dout = w.shape[1]
    tm = _pick_row_tile(R)
    tk = _pick_contract_tile(Din)
    tn = _pick_out_tile(Dout)
    return pl.pallas_call(
        _linear_tiled_kernel,
        out_shape=jax.ShapeDtypeStruct((R, Dout), out_dtype),
        grid=(pl.cdiv(R, tm), Dout // tn, Din // tk),
        in_specs=[
            pl.BlockSpec((tm, tk), lambda i, j, k: (i, k)),
            pl.BlockSpec((tk, tn), lambda i, j, k: (k, j)),
            pl.BlockSpec((1, tn), lambda i, j, k: (0, j)),
        ],
        out_specs=pl.BlockSpec((tm, tn), lambda i, j, k: (i, j)),
        scratch_shapes=[pltpu.VMEM((tm, tn), jnp.float32)],
        compiler_params=_cparams(("parallel", "parallel", "arbitrary")),
    )(x2d, w, b.reshape(1, Dout))


# ---------------------------------------------------------------------------
# Kernel 4: multi-head attention, heads fused, online softmax over kv tiles.
#   q_ref: (TQ, H*ch_qk), k_ref: (TL, H*ch_qk), v_ref: (TL, H*ch_v)
#   o_ref: (TQ, H*ch_v)   (lane-dense store in the original (B, N, H*ch) layout)
# ---------------------------------------------------------------------------
def _mha_kernel(q_ref, k_ref, v_ref, o_ref, m_sc, l_sc, acc_sc, *,
                num_heads, ch_qk, ch_v, kv_tile, kv_len, mask_kv):
    kv_i = pl.program_id(2)

    @pl.when(kv_i == 0)
    def _():
        m_sc[...] = jnp.full(m_sc.shape, -jnp.inf, jnp.float32)
        l_sc[...] = jnp.zeros(l_sc.shape, jnp.float32)
        acc_sc[...] = jnp.zeros(acc_sc.shape, jnp.float32)

    if mask_kv:
        # Only traced when K/V were zero-padded along kv: mask padded columns
        # to -inf BEFORE the running max so they contribute exp() == 0.
        col = lax.broadcasted_iota(jnp.int32, (q_ref.shape[0], kv_tile), 1)
        valid = (col + kv_i * kv_tile) < kv_len

    # Per-head Ref slices (zero-cost views): loads issued per head, bounding
    # vreg live ranges to one head's operands (no whole-tile materialization).
    for h in range(num_heads):
        q0, q1 = h * ch_qk, (h + 1) * ch_qk
        v0, v1 = h * ch_v, (h + 1) * ch_v

        q_h = q_ref[:, q0:q1]
        k_h = k_ref[:, q0:q1]

        # q_h @ k_h.T in MXU-native transposed-RHS form (no transpose copy).
        s = lax.dot_general(q_h, k_h, (((1,), (1,)), ((), ())),
                            preferred_element_type=jnp.float32)   # (TQ, TL)
        if mask_kv:
            s = jnp.where(valid, s, -jnp.inf)

        m_prev = m_sc[h]                                           # (TQ, 1)
        m_new = jnp.maximum(m_prev, jnp.max(s, axis=-1, keepdims=True))
        alpha = jnp.exp(m_prev - m_new)
        p = jnp.exp(s - m_new)
        l_sc[h] = alpha * l_sc[h] + jnp.sum(p, axis=-1, keepdims=True)

        v_h = v_ref[:, v0:v1]
        pv = lax.dot_general(p.astype(v_h.dtype), v_h,
                             (((1,), (0,)), ((), ())),
                             preferred_element_type=jnp.float32)   # (TQ, ch_v)
        # Lane-dense accumulator slab (TQ, H*ch_v): no concat epilogue needed.
        acc_sc[:, v0:v1] = alpha * acc_sc[:, v0:v1] + pv
        m_sc[h] = m_new

    @pl.when(kv_i == pl.num_programs(2) - 1)
    def _():
        # Normalize per head in scratch (EUP approx reciprocal ~ free), then
        # emit a single lane-dense (TQ, H*ch_v) store to the output.
        for h in range(num_heads):
            v0, v1 = h * ch_v, (h + 1) * ch_v
            inv = pl.reciprocal(l_sc[h], approx=True)
            acc_sc[:, v0:v1] = acc_sc[:, v0:v1] * inv
        o_ref[...] = acc_sc[...].astype(o_ref.dtype)


def fused_mha(q, k, v, num_heads):
    """q: (B, N, H*ch_qk), k: (B, L, H*ch_qk), v: (B, L, H*ch_v) -> (B, N, H*ch_v)."""
    B, N, Dqk = q.shape
    L = k.shape[1]
    Dv = v.shape[2]
    ch_qk = Dqk // num_heads
    ch_v = Dv // num_heads
    isz = q.dtype.itemsize

    tq = _pick_q_tile(N, B)
    tl, mask_kv = _pick_kv_tile(L, (Dqk + Dv) * isz, _VMEM_LIMIT // 2)

    kv_len = L
    if mask_kv:
        pad = pl.cdiv(L, tl) * tl - L
        k = jnp.pad(k, ((0, 0), (0, pad), (0, 0)))
        v = jnp.pad(v, ((0, 0), (0, pad), (0, 0)))
        L = L + pad

    grid = (B, pl.cdiv(N, tq), L // tl)
    kernel = functools.partial(_mha_kernel, num_heads=num_heads,
                               ch_qk=ch_qk, ch_v=ch_v, kv_tile=tl,
                               kv_len=kv_len, mask_kv=mask_kv)
    return pl.pallas_call(
        kernel,
        out_shape=jax.ShapeDtypeStruct((B, N, Dv), q.dtype),
        grid=grid,
        in_specs=[
            pl.BlockSpec((None, tq, Dqk), lambda b, qi, ki: (b, qi, 0)),
            # When tl == L the K/V block index is constant across qi, so K/V
            # are DMA'd once per batch and stay VMEM-resident for all q tiles.
            pl.BlockSpec((None, tl, Dqk), lambda b, qi, ki: (b, ki, 0)),
            pl.BlockSpec((None, tl, Dv), lambda b, qi, ki: (b, ki, 0)),
        ],
        out_specs=pl.BlockSpec((None, tq, Dv), lambda b, qi, ki: (b, qi, 0)),
        scratch_shapes=[
            pltpu.VMEM((num_heads, tq, 1), jnp.float32),   # running max (per head)
            pltpu.VMEM((num_heads, tq, 1), jnp.float32),   # running sum (per head)
            pltpu.VMEM((tq, Dv), jnp.float32),             # lane-dense output acc
        ],
        compiler_params=_cparams(("parallel", "parallel", "arbitrary")),
    )(q, k, v)


# ---------------------------------------------------------------------------
# Module wrapper (parameter container + forward glue)
# ---------------------------------------------------------------------------
class MoEAttentionBlockPallas:
    def __init__(self, num_heads, num_q_input_channels, num_kv_input_channels,
                 num_qk_channels=None, num_v_channels=None, key=None,
                 matmul_dtype=None):
        if num_qk_channels is None:
            num_qk_channels = num_q_input_channels
        if num_v_channels is None:
            num_v_channels = num_qk_channels
        assert num_qk_channels % num_heads == 0
        assert num_v_channels % num_heads == 0

        self.num_heads = num_heads
        self.num_qk_channels = num_qk_channels
        self.num_v_channels = num_v_channels
        self.dp_scale = (num_qk_channels // num_heads) ** (-0.5)
        # matmul_dtype=jnp.bfloat16 recommended on v5e (MXU-native rate);
        # softmax math stays f32 either way.
        self.matmul_dtype = matmul_dtype

        key = jax.random.PRNGKey(0) if key is None else key
        ks = jax.random.split(key, 6)
        init = lambda k, shp: jax.random.normal(k, shp, jnp.float32) * 0.02
        # Weights stored already transposed: (Din, Dout) so kernels do x @ W.
        self.wq = init(ks[0], (num_q_input_channels, num_qk_channels))
        self.bq = init(ks[1], (num_qk_channels,))
        self.wk = init(ks[2], (num_kv_input_channels, num_qk_channels))
        self.bk = init(ks[3], (num_qk_channels,))
        self.wv = init(ks[4], (num_kv_input_channels, num_v_channels))
        self.bv = init(ks[5], (num_v_channels,))

        wdt = jnp.float32 if matmul_dtype is None else matmul_dtype
        # dp_scale folded into the Q projection (zero-cost); optional cast of
        # weights to the matmul dtype (biases stay f32, added post-MXU).
        self.wq_m = (self.wq * self.dp_scale).astype(wdt)
        self.bq_m = self.bq * self.dp_scale
        self.wk_m = self.wk.astype(wdt)
        self.wv_m = self.wv.astype(wdt)

    def __call__(self, x_q, x_kv, pad_mask=None, rot_pos_emb_q=None,
                 rot_pos_emb_k=None, kv_cache=None):
        # TODO(synk): pad_mask, rotary pos-emb, causal attention, kv_cache and
        # attention dropout are not implemented in the Pallas path (defaults).
        B, N, Dq = x_q.shape
        L, Dkv = x_kv.shape[1], x_kv.shape[2]
        out_dtype = x_q.dtype if self.matmul_dtype is None else self.matmul_dtype

        xq2 = x_q.reshape(B * N, Dq)
        xkv2 = x_kv.reshape(B * L, Dkv)
        isz = self.wq_m.dtype.itemsize
        budget = _VMEM_LIMIT // 4

        # Q projection: resident-weight path when the weight fits comfortably,
        # else stream weight blocks through the tiled matmul.
        q_w_bytes = (Dq * self.num_qk_channels + self.num_qk_channels) * isz
        if q_w_bytes <= budget:
            q = q_proj_simple(xq2, self.wq_m, self.bq_m, out_dtype)
        else:
            q = linear_tiled(xq2, self.wq_m, self.bq_m, out_dtype)

        # K/V projections: fused (single x_kv HBM read) when both weights fit,
        # otherwise Dout/Din-tiled separate matmuls.
        kv_w_bytes = (Dkv * (self.num_qk_channels + self.num_v_channels)
                      + self.num_qk_channels + self.num_v_channels) * isz
        if kv_w_bytes <= budget:
            k, v = kv_proj_fused(xkv2, self.wk_m, self.bk, self.wv_m, self.bv,
                                 out_dtype)
        else:
            k = linear_tiled(xkv2, self.wk_m, self.bk, out_dtype)
            v = linear_tiled(xkv2, self.wv_m, self.bv, out_dtype)

        q = q.reshape(B, N, self.num_qk_channels)
        k = k.reshape(B, L, self.num_qk_channels)
        v = v.reshape(B, L, self.num_v_channels)

        # Heads split inside the kernel: no (b n (h c) -> b h n c) HBM transposes.
        o = fused_mha(q, k, v, self.num_heads)  # (B, N, H*ch_v)
        return {"last_hidden_state": o.astype(x_q.dtype), "kv_cache": None}


# ---------------------------------------------------------------------------
# Pure-JAX reference for verification (mirrors the PyTorch forward)
# ---------------------------------------------------------------------------
def reference_forward(block, x_q, x_kv):
    B, N, _ = x_q.shape
    L = x_kv.shape[1]
    H = block.num_heads
    ch_qk = block.num_qk_channels // H
    ch_v = block.num_v_channels // H

    q = x_q @ block.wq + block.bq
    k = x_kv @ block.wk + block.bk
    v = x_kv @ block.wv + block.bv
    q = q.reshape(B, N, H, ch_qk).transpose(0, 2, 1, 3) * block.dp_scale
    k = k.reshape(B, L, H, ch_qk).transpose(0, 2, 1, 3)
    v = v.reshape(B, L, H, ch_v).transpose(0, 2, 1, 3)
    attn = jnp.einsum("bhic,bhjc->bhij", q, k)
    attn = jax.nn.softmax(attn, axis=-1)
    o = jnp.einsum("bhij,bhjc->bhic", attn, v)
    return o.transpose(0, 2, 1, 3).reshape(B, N, H * ch_v)


if __name__ == "__main__":
    key = jax.random.PRNGKey(0)
    k_q, k_kv, k_params = jax.random.split(key, 3)

    B, N, L = 2, 8, 8
    D_Q, D_KV = 32, 32
    NUM_HEADS = 4

    x_q = jax.random.normal(k_q, (B, N, D_Q), jnp.float32)
    x_kv = jax.random.normal(k_kv, (B, L, D_KV), jnp.float32)

    block = MoEAttentionBlockPallas(
        num_heads=NUM_HEADS,
        num_q_input_channels=D_Q,
        num_kv_input_channels=D_KV,
        key=k_params,
    )

    out = block(x_q, x_kv)["last_hidden_state"]
    out = jax.block_until_ready(out)

    ref = reference_forward(block, x_q, x_kv)
    assert out.shape == (B, N, block.num_v_channels)
    # Tolerance loosened slightly for the EUP approximate reciprocal in the
    # softmax normalization (values are O(0.1); f32-exact path would be ~1e-7).
    assert jnp.allclose(out, ref, atol=2e-3, rtol=2e-3), "mismatch vs reference"

    print("KERNEL_OK")
</pallas_src>

<mosaic_0001>
module attributes {stable_mosaic.version = 11 : i64} {
  func.func @_q_proj_kernel(%arg0: i32, %arg1: memref<16x32xf32, #tpu.memory_space<vmem>>, %arg2: memref<32x32xf32, #tpu.memory_space<vmem>>, %arg3: memref<1x32xf32, #tpu.memory_space<vmem>>, %arg4: memref<16x32xf32, #tpu.memory_space<vmem>>) attributes {dimension_semantics = [#tpu.dimension_semantics<parallel>], iteration_bounds = array<i64: 1>, scalar_prefetch = 0 : i64, scratch_operands = 0 : i64, tpu.core_type = #tpu.core_type<tc>, window_params = [{transform_indices = @transform_0, window_bounds = array<i64: 16, 32>}, {pipeline_mode = #tpu.pipeline_mode<synchronous>, transform_indices = @transform_1, window_bounds = array<i64: 32, 32>}, {pipeline_mode = #tpu.pipeline_mode<synchronous>, transform_indices = @transform_2, window_bounds = array<i64: 1, 32>}, {transform_indices = @transform_3, window_bounds = array<i64: 16, 32>}]} {
    %c0 = arith.constant 0 : index
    %c0_0 = arith.constant 0 : index
    %0 = vector.load %arg1[%c0, %c0_0] : memref<16x32xf32, #tpu.memory_space<vmem>>, vector<16x32xf32>
    %c0_1 = arith.constant 0 : index
    %c0_2 = arith.constant 0 : index
    %1 = vector.load %arg2[%c0_1, %c0_2] : memref<32x32xf32, #tpu.memory_space<vmem>>, vector<32x32xf32>
    %cst = arith.constant dense<0.000000e+00> : vector<16x32xf32>
    %2 = tpu.matmul %0, %1, %cst {dimension_numbers = #tpu.dot_dimension_numbers<[1], [0], [0], [1], [0, 0, 1, 1], [], []>} : vector<16x32xf32>, vector<32x32xf32>, vector<16x32xf32> -> vector<16x32xf32>
    %c0_3 = arith.constant 0 : index
    %c0_4 = arith.constant 0 : index
    %3 = vector.load %arg3[%c0_3, %c0_4] : memref<1x32xf32, #tpu.memory_space<vmem>>, vector<1x32xf32>
    %4 = vector.broadcast %3 : vector<1x32xf32> to vector<16x32xf32>
    %5 = arith.addf %2, %4 : vector<16x32xf32>
    %c0_5 = arith.constant 0 : index
    %c0_6 = arith.constant 0 : index
    %6 = vector.load %arg4[%c0_5, %c0_6] : memref<16x32xf32, #tpu.memory_space<vmem>>, vector<16x32xf32>
    tpu.vector_store %arg4[%c0_5, %c0_6], %5 {strides = array<i32>} : memref<16x32xf32, #tpu.memory_space<vmem>>, vector<16x32xf32>,
    return
  }
  func.func @transform_0(%arg0: i32) -> (i32, i32) {
    %c0_i32 = arith.constant 0 : i32
    %c0_i32_0 = arith.constant 0 : i32
    return %arg0, %c0_i32 : i32, i32
  }
  func.func @transform_1(%arg0: i32) -> (i32, i32) {
    %c0_i32 = arith.constant 0 : i32
    %c0_i32_0 = arith.constant 0 : i32
    %c0_i32_1 = arith.constant 0 : i32
    return %c0_i32, %c0_i32_0 : i32, i32
  }
  func.func @transform_2(%arg0: i32) -> (i32, i32) {
    %c0_i32 = arith.constant 0 : i32
    %c0_i32_0 = arith.constant 0 : i32
    %c0_i32_1 = arith.constant 0 : i32
    return %c0_i32, %c0_i32_0 : i32, i32
  }
  func.func @transform_3(%arg0: i32) -> (i32, i32) {
    %c0_i32 = arith.constant 0 : i32
    %c0_i32_0 = arith.constant 0 : i32
    return %arg0, %c0_i32 : i32, i32
  }
}

</mosaic_0001>

<bundles_post_ra>
// kernel: tpu_custom_call.1
= control target key start
LH: loop header
LB: loop body
LE: loop exit
PB: predicated region body
PF: predicated region fallthrough
CT: control target
= control target key end

     0   :  { %8 = vsyncpa [#allocation3], 0  ;;  %s249_s0 = inlined_call_operand.hbm [shape: f32[16,32], index: 0, kind: input, shape index: {}]   ;;  %s250_s1 = inlined_call_operand.hbm [shape: f32[32,32], index: 1, kind: input, shape index: {}]   ;;  %s251_s2 = inlined_call_operand.vmem [shape: f32[1,32], index: 2, kind: input, shape index: {}]   ;;  %s252_s3 = inlined_call_operand.hbm [shape: f32[16,32], index: 3, kind: output, shape index: {}]  }
   0x1   :  { %9 = vsyncpa [#allocation6], 0 }
   0x2   :  { %10 = vsyncpa [#allocation4], 0  ;;  %s15_s14 = sshll.u32 %s249_s0, 4  ;;  %s199_s15 = smov [#allocation2]   ;;  %s16_s14 = int_to_ptr.hbm [resolvable:$true] %s15_s14 }
   0x3   :  { %s17_s16 = sshll.u32 %s199_s15, 4  ;;  %s28_s19 = sshll.u32 %s250_s1, 4  ;;  %s18_s16 = int_to_ptr.vmem [resolvable:$true] %s17_s16  ;;  %s29_s19 = int_to_ptr.hbm [resolvable:$true] %s28_s19 }
   0x4   :  { %s200_s20 = smov 128   ;;  %s201_s21 = smov 8  }
   0x5   :  { %23 = dma.hbm_to_vmem [thread:$0]  %s16_s14, 256, %s18_s16, [#allocation3], %s200_s20, %s200_s20, %s201_s21  }
   0x6   :  { %s202_s22 = smov [#allocation5]  }
   0x7   :  { %s30_s23 = sshll.u32 %s202_s22, 4  ;;  %s31_s23 = int_to_ptr.vmem [resolvable:$true] %s30_s23 }
   0x8   :  { %36 = dma.hbm_to_vmem [thread:$0]  %s29_s19, 512, %s31_s23, [#allocation6], %s200_s20, %s200_s20, %s201_s21  }
   0x9   :  { %193 = dma.done.wait [#allocation3], 256  }
   0xa   :  { %194 = vsyncadd [#allocation3], 4294967040 }
   0xb   :  { %195 = dma.done.wait [#allocation6], 512  }
   0xc   :  { %196 = vsyncadd [#allocation6], 4294966784  ;;  %v52_v0 = vld [vmem:[#allocation5 + $0x18] sm:$0xff]  ;;  %v51_v1 = vld [vmem:[#allocation5 + $0x10] sm:$0xff]  ;;  %vm57_vm0 = vcmask 261120   ;;  %s203_s24 = smov [#allocation7]  }
   0xd   :  { %76 = vmatpush.msra.mxu0 %v52_v0  ;;  %111 = vmatpush.msra.mxu1 %v52_v0  ;;  %v50_v2 = vld [vmem:[#allocation5 + $0x8] sm:$0xff]  ;;  %v49_v3 = vld [vmem:[#allocation5] sm:$0xff]  ;;  %v47_v4 = vld [vmem:[#allocation2] sm:$0xff]  ;;  %s93_s25 = sshll.u32 %s203_s24, 4  ;;  %s95_s28 = sshll.u32 %s252_s3, 4  ;;  %s94_s25 = int_to_ptr.vmem [resolvable:$true] %s93_s25  ;;  %s96_s28 = int_to_ptr.hbm [resolvable:$true] %s95_s28 }
   0xe   :  { %v48_v5 = vld [vmem:[#allocation2 + $0x8] sm:$0xff]  ;;  %v120_v6 = vld [vmem:[%s251_s2] ss:$0 sm:$0xff] }
   0xf   :  { %77 = vmatpush.msra.mxu0 %v51_v1  ;;  %112 = vmatpush.msra.mxu1 %v51_v1 }
  0x11   :  { %78 = vmatpush.msra.mxu0 %v50_v2  ;;  %113 = vmatpush.msra.mxu1 %v50_v2 }
  0x13   :  { %79 = vmatpush.msra.mxu0 %v49_v3  ;;  %114 = vmatpush.msra.mxu1 %v49_v3 }
  0x14   :  { %109 = vmatmul.msk.f32.vlgmr.msra.gmra.mxu0 %vm57_vm0, %v47_v4  ;;  %110 = vmatmul.msk.f32.vlgmr.msra.gmra.mxu1 %vm57_vm0, %v48_v5 }
  0x91   :  { %v81_v7 = vpop.f32.mrf.mxu0  ;;  %v84_v8 = vpop.f32.mrf.mxu1 }
  0x92   :  { %v82_v9 = vadd.f32 %v120_v6, %v81_v7  ;;  %v85_v10 = vadd.f32 %v120_v6, %v84_v8 }
  0x94   :  { %87 = vst.msk [vmem:[#allocation7] sm:$0xff] %vm57_vm0, %v82_v9 }
  0x95   :  { %88 = vst.msk [vmem:[#allocation7 + $0x8] sm:$0xff] %vm57_vm0, %v85_v10 }
  0x96   :  { %101 = dma.vmem_to_hbm [thread:$0]  %s94_s25, 256, %s96_s28, [#allocation4], %s200_s20, %s200_s20, %s201_s21  }
  0x97   :  { %197 = dma.done.wait [#allocation4], 256  }
  0x98   :  { %198 = vsyncadd [#allocation4], 4294967040 }
  0x99   :  { %106 = vsyncpa [#allocation3], 1 }
  0x9a   :  { %107 = vsyncpa [#allocation6], 1 }
  0x9b   :  { %108 = vsyncpa [#allocation4], 1 }

</bundles_post_ra>
